<compile_context>
chip_gen: v6e
topology: v6e:2x2x1
jax: 0.10.0
libtpu: 0.0.40
codegen_flags: <defaults>
</compile_context>

<pallas_src>
import math
import functools

import jax
import jax.numpy as jnp
from jax import lax
from jax.experimental import pallas as pl
from jax.experimental.pallas import tpu as pltpu


def _pick_tile(T, prefs):
    for t in prefs:
        if t <= T and T % t == 0:
            return t
    return T


def _vmem_limit_bytes():
    # ~75% of physical VMEM: v5e/v6e 128 MiB -> 96 MiB, v7x 64 MiB -> 48 MiB,
    # leaving headroom for Mosaic internal scratch / semaphores.
    try:
        cap = int(pltpu.get_tpu_info().vmem_capacity_bytes)
    except Exception:
        cap = 64 * 1024 * 1024
    return cap * 3 // 4


# ---------------------------------------------------------------------------
# Kernel A: fused QKV projection -> head-major q/k/v (bf16), q pre-scaled.
# ---------------------------------------------------------------------------
def _qkv_proj_kernel(x_ref, w_ref, b_ref, q_ref, k_ref, v_ref, *,
                     n_head, head_dim, scale):
    C = n_head * head_dim
    x = x_ref[0]                                                    # (tp, C) bf16
    # One (tp, C) x (C, 3C) matmul; weight/bias resident across the whole grid.
    qkv = jnp.dot(x, w_ref[...], preferred_element_type=jnp.float32) + b_ref[...]
    # Static per-head lane slices -> head-major outputs.
    # TODO(synk): when head_dim < 128, pack two heads per 128-lane slab to avoid
    # masked (lane-sparse) stores of the hd-wide head slices.
    for h in range(n_head):
        lo = h * head_dim
        q_ref[0, h] = (qkv[:, lo:lo + head_dim] * scale).astype(q_ref.dtype)
        k_ref[0, h] = qkv[:, C + lo:C + lo + head_dim].astype(k_ref.dtype)
        v_ref[0, h] = qkv[:, 2 * C + lo:2 * C + lo + head_dim].astype(v_ref.dtype)


# ---------------------------------------------------------------------------
# Kernel B: causal flash attention, one (batch, head) per outer step,
# K/V resident in VMEM across all q tiles of that (batch, head).
# ---------------------------------------------------------------------------
def _flash_attn_kernel(q_ref, k_ref, v_ref, y_ref, *, kv_tile):
    i = pl.program_id(2)                      # q-tile index (innermost grid axis)
    tq, hd = q_ref.shape[2], q_ref.shape[3]
    tk = kv_tile
    q = q_ref[0, 0]                           # (tq, hd) bf16, already scaled
    row0 = i * tq                             # global row offset of this q tile

    def attend(carry, j, masked):
        m, l, o = carry
        start = pl.multiple_of(j * tk, tk)
        kj = k_ref[0, 0, pl.ds(start, tk), :]                      # (tk, hd)
        vj = v_ref[0, 0, pl.ds(start, tk), :]
        # q @ k^T: contract last dims of both (no explicit transpose).
        s = lax.dot_general(q, kj, (((1,), (1,)), ((), ())),
                            preferred_element_type=jnp.float32)    # (tq, tk) f32
        if masked:
            row = row0 + lax.broadcasted_iota(jnp.int32, (tq, tk), 0)
            col = start + lax.broadcasted_iota(jnp.int32, (tq, tk), 1)
            s = jnp.where(row >= col, s, -1e30)
        m_new = jnp.maximum(m, jnp.max(s, axis=-1, keepdims=True))
        alpha = jnp.exp(m - m_new)
        p = jnp.exp(s - m_new)
        l_new = alpha * l + jnp.sum(p, axis=-1, keepdims=True)
        o_new = alpha * o + jnp.dot(p.astype(vj.dtype), vj,
                                    preferred_element_type=jnp.float32)
        return m_new, l_new, o_new

    m0 = jnp.full((tq, 1), -jnp.inf, jnp.float32)
    l0 = jnp.zeros((tq, 1), jnp.float32)
    o0 = jnp.zeros((tq, hd), jnp.float32)
    carry = (m0, l0, o0)

    # Causal tile bookkeeping (global coords; valid for any tq/tk combination).
    n_full = row0 // tk                        # kv tiles fully below the diagonal
    n_vis = (row0 + tq + tk - 1) // tk         # kv tiles with any visible column
    n_pairs = n_full // 2

    # Unmasked tiles, manually unrolled x2 so exp/row-reduce of one tile can
    # overlap the MXU matmuls of the next.
    def pair_body(p_, c):
        j0 = 2 * p_
        c = attend(c, j0, masked=False)
        c = attend(c, j0 + 1, masked=False)
        return c

    carry = lax.fori_loop(0, n_pairs, pair_body, carry)

    # Remaining tiles (odd leftover + diagonal region) with the causal mask.
    def tail_body(j, c):
        return attend(c, j, masked=True)

    m, l, o = lax.fori_loop(2 * n_pairs, n_vis, tail_body, carry)

    inv_l = pl.reciprocal(l, approx=False)
    y_ref[0, 0] = (o * inv_l).astype(y_ref.dtype)


# ---------------------------------------------------------------------------
# Kernel C: output projection as one full-K lane-dense GEMM per tile.
# ---------------------------------------------------------------------------
def _out_proj_kernel(y_ref, w_ref, b_ref, o_ref, *, n_head):
    # Assemble lane-dense (tp, C) from the per-head slabs, then one MXU matmul
    # against the resident c_proj weight; bias added once in f32.
    y = jnp.concatenate([y_ref[0, h] for h in range(n_head)], axis=-1)
    out = jnp.dot(y, w_ref[...], preferred_element_type=jnp.float32) + b_ref[...]
    o_ref[0] = out.astype(o_ref.dtype)


def causal_self_attention(x, w_qkv, b_qkv, w_proj, b_proj, n_head):
    B, T, C = x.shape
    H = n_head
    assert C % H == 0
    hd = C // H
    scale = 1.0 / math.sqrt(hd)

    tp = _pick_tile(T, (512, 256, 128))   # row tile for the two projection GEMMs
    tq = _pick_tile(T, (256, 128, 512))   # flash q tile (small -> low carry pressure)
    tk = _pick_tile(T, (512, 256, 128))   # flash kv tile (in-VMEM loop granularity)
    n_tp = T // tp
    n_tq = T // tq

    vmem = _vmem_limit_bytes()

    # Wrapper-side dtype plumbing only (no transposes): bf16 MXU operands, f32 biases.
    xb = x.astype(jnp.bfloat16)
    wqkv = w_qkv.astype(jnp.bfloat16)                  # (C, 3C), kept resident
    bqkv = b_qkv.reshape(1, 3 * C).astype(jnp.float32)
    wp = w_proj.astype(jnp.bfloat16)                   # (C, C), kept resident
    bp = b_proj.reshape(1, C).astype(jnp.float32)

    # ------------------ Kernel A: QKV projection ------------------
    q, k, v = pl.pallas_call(
        functools.partial(_qkv_proj_kernel, n_head=H, head_dim=hd, scale=scale),
        out_shape=(
            jax.ShapeDtypeStruct((B, H, T, hd), jnp.bfloat16),
            jax.ShapeDtypeStruct((B, H, T, hd), jnp.bfloat16),
            jax.ShapeDtypeStruct((B, H, T, hd), jnp.bfloat16),
        ),
        grid_spec=pltpu.PrefetchScalarGridSpec(
            num_scalar_prefetch=0,
            grid=(B, n_tp),
            in_specs=[
                pl.BlockSpec((1, tp, C), lambda b, i: (b, i, 0)),      # x tile
                pl.BlockSpec((C, 3 * C), lambda b, i: (0, 0)),         # W_qkv resident
                pl.BlockSpec((1, 3 * C), lambda b, i: (0, 0)),         # b_qkv resident
            ],
            out_specs=(
                pl.BlockSpec((1, H, tp, hd), lambda b, i: (b, 0, i, 0)),
                pl.BlockSpec((1, H, tp, hd), lambda b, i: (b, 0, i, 0)),
                pl.BlockSpec((1, H, tp, hd), lambda b, i: (b, 0, i, 0)),
            ),
        ),
        compiler_params=pltpu.CompilerParams(
            dimension_semantics=("parallel", "parallel"),
            vmem_limit_bytes=vmem,
        ),
    )(xb, wqkv, bqkv)

    # ------------------ Kernel B: causal flash attention ------------------
    y = pl.pallas_call(
        functools.partial(_flash_attn_kernel, kv_tile=tk),
        out_shape=jax.ShapeDtypeStruct((B, H, T, hd), jnp.bfloat16),
        grid_spec=pltpu.PrefetchScalarGridSpec(
            num_scalar_prefetch=0,
            # q-tile axis innermost: K/V block index (b,h,0,0) is constant across
            # it, so each head's K and V are DMA'd from HBM exactly once.
            grid=(B, H, n_tq),
            in_specs=[
                pl.BlockSpec((1, 1, tq, hd), lambda b, h, i: (b, h, i, 0)),
                pl.BlockSpec((1, 1, T, hd), lambda b, h, i: (b, h, 0, 0)),
                pl.BlockSpec((1, 1, T, hd), lambda b, h, i: (b, h, 0, 0)),
            ],
            out_specs=pl.BlockSpec((1, 1, tq, hd), lambda b, h, i: (b, h, i, 0)),
        ),
        compiler_params=pltpu.CompilerParams(
            # B/H are balanced across cores; the causally-imbalanced q-tile axis
            # stays sequential per core.
            dimension_semantics=("parallel", "parallel", "arbitrary"),
            vmem_limit_bytes=vmem,
        ),
    )(q, k, v)

    # ------------------ Kernel C: output projection ------------------
    out = pl.pallas_call(
        functools.partial(_out_proj_kernel, n_head=H),
        out_shape=jax.ShapeDtypeStruct((B, T, C), x.dtype),
        grid_spec=pltpu.PrefetchScalarGridSpec(
            num_scalar_prefetch=0,
            grid=(B, n_tp),
            in_specs=[
                pl.BlockSpec((1, H, tp, hd), lambda b, i: (b, 0, i, 0)),  # y (all heads)
                pl.BlockSpec((C, C), lambda b, i: (0, 0)),                # W_proj resident
                pl.BlockSpec((1, C), lambda b, i: (0, 0)),                # b_proj resident
            ],
            out_specs=pl.BlockSpec((1, tp, C), lambda b, i: (b, i, 0)),   # lane-dense
        ),
        compiler_params=pltpu.CompilerParams(
            dimension_semantics=("parallel", "parallel"),
            vmem_limit_bytes=vmem,
        ),
    )(y, wp, bp)
    return out


def reference(x, w_qkv, b_qkv, w_proj, b_proj, n_head):
    B, T, C = x.shape
    hd = C // n_head
    qkv = x @ w_qkv + b_qkv[0]
    q, k, v = jnp.split(qkv, 3, axis=-1)
    q = q.reshape(B, T, n_head, hd).transpose(0, 2, 1, 3)
    k = k.reshape(B, T, n_head, hd).transpose(0, 2, 1, 3)
    v = v.reshape(B, T, n_head, hd).transpose(0, 2, 1, 3)
    s = jnp.einsum("bhqd,bhkd->bhqk", q, k) / math.sqrt(hd)
    mask = jnp.tril(jnp.ones((T, T), bool))
    s = jnp.where(mask, s, -jnp.inf)
    p = jax.nn.softmax(s, axis=-1)
    y = jnp.einsum("bhqk,bhkd->bhqd", p, v)
    y = y.transpose(0, 2, 1, 3).reshape(B, T, C)
    return y @ w_proj + b_proj[0]


if __name__ == "__main__":
    B, T, C, n_head = 2, 8, 32, 4

    key = jax.random.PRNGKey(0)
    k1, k2, k3, k4, k5 = jax.random.split(key, 5)
    x = jax.random.normal(k1, (B, T, C), jnp.float32)

    # nn.Linear(C, 3C): stored transposed as (C, 3C) so y = x @ W + b.
    w_qkv = 0.02 * jax.random.normal(k2, (C, 3 * C), jnp.float32) * math.sqrt(C)
    b_qkv = 0.01 * jax.random.normal(k3, (1, 3 * C), jnp.float32)
    # nn.Linear(C, C): stored transposed as (C, C).
    w_proj = 0.02 * jax.random.normal(k4, (C, C), jnp.float32) * math.sqrt(C)
    b_proj = 0.01 * jax.random.normal(k5, (1, C), jnp.float32)

    out = causal_self_attention(x, w_qkv, b_qkv, w_proj, b_proj, n_head)
    out = jax.block_until_ready(out)

    ref = reference(x, w_qkv, b_qkv, w_proj, b_proj, n_head)
    assert out.shape == (B, T, C)
    max_err = float(jnp.max(jnp.abs(out - ref)))
    # bf16 MXU operands with f32 softmax/accumulation -> loose tolerance.
    assert jnp.allclose(out, ref, atol=5e-2, rtol=5e-2), max_err

    print("KERNEL_OK")
</pallas_src>

<mosaic_0001>
module attributes {stable_mosaic.version = 11 : i64} {
  func.func @_qkv_proj_kernel(%arg0: i32, %arg1: i32, %arg2: memref<1x8x32xbf16, #tpu.memory_space<vmem>>, %arg3: memref<32x96xbf16, #tpu.memory_space<vmem>>, %arg4: memref<1x96xf32, #tpu.memory_space<vmem>>, %arg5: memref<1x4x8x8xbf16, #tpu.memory_space<vmem>>, %arg6: memref<1x4x8x8xbf16, #tpu.memory_space<vmem>>, %arg7: memref<1x4x8x8xbf16, #tpu.memory_space<vmem>>) attributes {dimension_semantics = [#tpu.dimension_semantics<parallel>, #tpu.dimension_semantics<parallel>], iteration_bounds = array<i64: 2, 1>, scalar_prefetch = 0 : i64, scratch_operands = 0 : i64, tpu.core_type = #tpu.core_type<tc>, window_params = [{transform_indices = @transform_0, window_bounds = array<i64: 1, 8, 32>}, {pipeline_mode = #tpu.pipeline_mode<synchronous>, transform_indices = @transform_1, window_bounds = array<i64: 32, 96>}, {pipeline_mode = #tpu.pipeline_mode<synchronous>, transform_indices = @transform_2, window_bounds = array<i64: 1, 96>}, {transform_indices = @transform_3, window_bounds = array<i64: 1, 4, 8, 8>}, {transform_indices = @transform_4, window_bounds = array<i64: 1, 4, 8, 8>}, {transform_indices = @transform_5, window_bounds = array<i64: 1, 4, 8, 8>}]} {
    %c0 = arith.constant 0 : index
    %c0_0 = arith.constant 0 : index
    %c0_1 = arith.constant 0 : index
    %0 = vector.load %arg2[%c0, %c0_0, %c0_1] : memref<1x8x32xbf16, #tpu.memory_space<vmem>>, vector<1x8x32xbf16>
    %1 = vector.shape_cast %0 : vector<1x8x32xbf16> to vector<8x32xbf16>
    %c0_2 = arith.constant 0 : index
    %c0_3 = arith.constant 0 : index
    %2 = vector.load %arg3[%c0_2, %c0_3] : memref<32x96xbf16, #tpu.memory_space<vmem>>, vector<32x96xbf16>
    %cst = arith.constant dense<0.000000e+00> : vector<8x96xf32>
    %3 = tpu.matmul %1, %2, %cst {dimension_numbers = #tpu.dot_dimension_numbers<[1], [0], [0], [1], [0, 0, 1, 1], [], []>} : vector<8x32xbf16>, vector<32x96xbf16>, vector<8x96xf32> -> vector<8x96xf32>
    %c0_4 = arith.constant 0 : index
    %c0_5 = arith.constant 0 : index
    %4 = vector.load %arg4[%c0_4, %c0_5] : memref<1x96xf32, #tpu.memory_space<vmem>>, vector<1x96xf32>
    %5 = vector.broadcast %4 : vector<1x96xf32> to vector<8x96xf32>
    %6 = arith.addf %3, %5 : vector<8x96xf32>
    %7 = vector.extract_strided_slice %6 {offsets = [0, 0], sizes = [8, 8], strides = [1, 1]} : vector<8x96xf32> to vector<8x8xf32>
    %cst_6 = arith.constant 0.353553385 : f32
    %8 = vector.broadcast %cst_6 : f32 to vector<8x8xf32>
    %9 = arith.mulf %7, %8 : vector<8x8xf32>
    %10 = arith.truncf %9 : vector<8x8xf32> to vector<8x8xbf16>
    %c0_7 = arith.constant 0 : index
    %c0_8 = arith.constant 0 : index
    %c0_9 = arith.constant 0 : index
    %c0_10 = arith.constant 0 : index
    %11 = vector.load %arg5[%c0_7, %c0_8, %c0_9, %c0_10] : memref<1x4x8x8xbf16, #tpu.memory_space<vmem>>, vector<1x1x8x8xbf16>
    %12 = vector.shape_cast %11 : vector<1x1x8x8xbf16> to vector<8x8xbf16>
    %13 = vector.shape_cast %10 : vector<8x8xbf16> to vector<1x1x8x8xbf16>
    tpu.vector_store %arg5[%c0_7, %c0_8, %c0_9, %c0_10], %13 {strides = array<i32>} : memref<1x4x8x8xbf16, #tpu.memory_space<vmem>>, vector<1x1x8x8xbf16>,
    %14 = vector.extract_strided_slice %6 {offsets = [0, 32], sizes = [8, 8], strides = [1, 1]} : vector<8x96xf32> to vector<8x8xf32>
    %15 = arith.truncf %14 : vector<8x8xf32> to vector<8x8xbf16>
    %c0_11 = arith.constant 0 : index
    %c0_12 = arith.constant 0 : index
    %c0_13 = arith.constant 0 : index
    %c0_14 = arith.constant 0 : index
    %16 = vector.load %arg6[%c0_11, %c0_12, %c0_13, %c0_14] : memref<1x4x8x8xbf16, #tpu.memory_space<vmem>>, vector<1x1x8x8xbf16>
    %17 = vector.shape_cast %16 : vector<1x1x8x8xbf16> to vector<8x8xbf16>
    %18 = vector.shape_cast %15 : vector<8x8xbf16> to vector<1x1x8x8xbf16>
    tpu.vector_store %arg6[%c0_11, %c0_12, %c0_13, %c0_14], %18 {strides = array<i32>} : memref<1x4x8x8xbf16, #tpu.memory_space<vmem>>, vector<1x1x8x8xbf16>,
    %19 = vector.extract_strided_slice %6 {offsets = [0, 64], sizes = [8, 8], strides = [1, 1]} : vector<8x96xf32> to vector<8x8xf32>
    %20 = arith.truncf %19 : vector<8x8xf32> to vector<8x8xbf16>
    %c0_15 = arith.constant 0 : index
    %c0_16 = arith.constant 0 : index
    %c0_17 = arith.constant 0 : index
    %c0_18 = arith.constant 0 : index
    %21 = vector.load %arg7[%c0_15, %c0_16, %c0_17, %c0_18] : memref<1x4x8x8xbf16, #tpu.memory_space<vmem>>, vector<1x1x8x8xbf16>
    %22 = vector.shape_cast %21 : vector<1x1x8x8xbf16> to vector<8x8xbf16>
    %23 = vector.shape_cast %20 : vector<8x8xbf16> to vector<1x1x8x8xbf16>
    tpu.vector_store %arg7[%c0_15, %c0_16, %c0_17, %c0_18], %23 {strides = array<i32>} : memref<1x4x8x8xbf16, #tpu.memory_space<vmem>>, vector<1x1x8x8xbf16>,
    %24 = vector.extract_strided_slice %6 {offsets = [0, 8], sizes = [8, 8], strides = [1, 1]} : vector<8x96xf32> to vector<8x8xf32>
    %cst_19 = arith.constant 0.353553385 : f32
    %25 = vector.broadcast %cst_19 : f32 to vector<8x8xf32>
    %26 = arith.mulf %24, %25 : vector<8x8xf32>
    %27 = arith.truncf %26 : vector<8x8xf32> to vector<8x8xbf16>
    %c0_20 = arith.constant 0 : index
    %c1 = arith.constant 1 : index
    %c0_21 = arith.constant 0 : index
    %c0_22 = arith.constant 0 : index
    %28 = vector.load %arg5[%c0_20, %c1, %c0_21, %c0_22] : memref<1x4x8x8xbf16, #tpu.memory_space<vmem>>, vector<1x1x8x8xbf16>
    %29 = vector.shape_cast %28 : vector<1x1x8x8xbf16> to vector<8x8xbf16>
    %30 = vector.shape_cast %27 : vector<8x8xbf16> to vector<1x1x8x8xbf16>
    tpu.vector_store %arg5[%c0_20, %c1, %c0_21, %c0_22], %30 {strides = array<i32>} : memref<1x4x8x8xbf16, #tpu.memory_space<vmem>>, vector<1x1x8x8xbf16>,
    %31 = vector.extract_strided_slice %6 {offsets = [0, 40], sizes = [8, 8], strides = [1, 1]} : vector<8x96xf32> to vector<8x8xf32>
    %32 = arith.truncf %31 : vector<8x8xf32> to vector<8x8xbf16>
    %c0_23 = arith.constant 0 : index
    %c1_24 = arith.constant 1 : index
    %c0_25 = arith.constant 0 : index
    %c0_26 = arith.constant 0 : index
    %33 = vector.load %arg6[%c0_23, %c1_24, %c0_25, %c0_26] : memref<1x4x8x8xbf16, #tpu.memory_space<vmem>>, vector<1x1x8x8xbf16>
    %34 = vector.shape_cast %33 : vector<1x1x8x8xbf16> to vector<8x8xbf16>
    %35 = vector.shape_cast %32 : vector<8x8xbf16> to vector<1x1x8x8xbf16>
    tpu.vector_store %arg6[%c0_23, %c1_24, %c0_25, %c0_26], %35 {strides = array<i32>} : memref<1x4x8x8xbf16, #tpu.memory_space<vmem>>, vector<1x1x8x8xbf16>,
    %36 = vector.extract_strided_slice %6 {offsets = [0, 72], sizes = [8, 8], strides = [1, 1]} : vector<8x96xf32> to vector<8x8xf32>
    %37 = arith.truncf %36 : vector<8x8xf32> to vector<8x8xbf16>
    %c0_27 = arith.constant 0 : index
    %c1_28 = arith.constant 1 : index
    %c0_29 = arith.constant 0 : index
    %c0_30 = arith.constant 0 : index
    %38 = vector.load %arg7[%c0_27, %c1_28, %c0_29, %c0_30] : memref<1x4x8x8xbf16, #tpu.memory_space<vmem>>, vector<1x1x8x8xbf16>
    %39 = vector.shape_cast %38 : vector<1x1x8x8xbf16> to vector<8x8xbf16>
    %40 = vector.shape_cast %37 : vector<8x8xbf16> to vector<1x1x8x8xbf16>
    tpu.vector_store %arg7[%c0_27, %c1_28, %c0_29, %c0_30], %40 {strides = array<i32>} : memref<1x4x8x8xbf16, #tpu.memory_space<vmem>>, vector<1x1x8x8xbf16>,
    %41 = vector.extract_strided_slice %6 {offsets = [0, 16], sizes = [8, 8], strides = [1, 1]} : vector<8x96xf32> to vector<8x8xf32>
    %cst_31 = arith.constant 0.353553385 : f32
    %42 = vector.broadcast %cst_31 : f32 to vector<8x8xf32>
    %43 = arith.mulf %41, %42 : vector<8x8xf32>
    %44 = arith.truncf %43 : vector<8x8xf32> to vector<8x8xbf16>
    %c0_32 = arith.constant 0 : index
    %c2 = arith.constant 2 : index
    %c0_33 = arith.constant 0 : index
    %c0_34 = arith.constant 0 : index
    %45 = vector.load %arg5[%c0_32, %c2, %c0_33, %c0_34] : memref<1x4x8x8xbf16, #tpu.memory_space<vmem>>, vector<1x1x8x8xbf16>
    %46 = vector.shape_cast %45 : vector<1x1x8x8xbf16> to vector<8x8xbf16>
    %47 = vector.shape_cast %44 : vector<8x8xbf16> to vector<1x1x8x8xbf16>
    tpu.vector_store %arg5[%c0_32, %c2, %c0_33, %c0_34], %47 {strides = array<i32>} : memref<1x4x8x8xbf16, #tpu.memory_space<vmem>>, vector<1x1x8x8xbf16>,
    %48 = vector.extract_strided_slice %6 {offsets = [0, 48], sizes = [8, 8], strides = [1, 1]} : vector<8x96xf32> to vector<8x8xf32>
    %49 = arith.truncf %48 : vector<8x8xf32> to vector<8x8xbf16>
    %c0_35 = arith.constant 0 : index
    %c2_36 = arith.constant 2 : index
    %c0_37 = arith.constant 0 : index
    %c0_38 = arith.constant 0 : index
    %50 = vector.load %arg6[%c0_35, %c2_36, %c0_37, %c0_38] : memref<1x4x8x8xbf16, #tpu.memory_space<vmem>>, vector<1x1x8x8xbf16>
    %51 = vector.shape_cast %50 : vector<1x1x8x8xbf16> to vector<8x8xbf16>
    %52 = vector.shape_cast %49 : vector<8x8xbf16> to vector<1x1x8x8xbf16>
    tpu.vector_store %arg6[%c0_35, %c2_36, %c0_37, %c0_38], %52 {strides = array<i32>} : memref<1x4x8x8xbf16, #tpu.memory_space<vmem>>, vector<1x1x8x8xbf16>,
    %53 = vector.extract_strided_slice %6 {offsets = [0, 80], sizes = [8, 8], strides = [1, 1]} : vector<8x96xf32> to vector<8x8xf32>
    %54 = arith.truncf %53 : vector<8x8xf32> to vector<8x8xbf16>
    %c0_39 = arith.constant 0 : index
    %c2_40 = arith.constant 2 : index
    %c0_41 = arith.constant 0 : index
    %c0_42 = arith.constant 0 : index
    %55 = vector.load %arg7[%c0_39, %c2_40, %c0_41, %c0_42] : memref<1x4x8x8xbf16, #tpu.memory_space<vmem>>, vector<1x1x8x8xbf16>
    %56 = vector.shape_cast %55 : vector<1x1x8x8xbf16> to vector<8x8xbf16>
    %57 = vector.shape_cast %54 : vector<8x8xbf16> to vector<1x1x8x8xbf16>
    tpu.vector_store %arg7[%c0_39, %c2_40, %c0_41, %c0_42], %57 {strides = array<i32>} : memref<1x4x8x8xbf16, #tpu.memory_space<vmem>>, vector<1x1x8x8xbf16>,
    %58 = vector.extract_strided_slice %6 {offsets = [0, 24], sizes = [8, 8], strides = [1, 1]} : vector<8x96xf32> to vector<8x8xf32>
    %cst_43 = arith.constant 0.353553385 : f32
    %59 = vector.broadcast %cst_43 : f32 to vector<8x8xf32>
    %60 = arith.mulf %58, %59 : vector<8x8xf32>
    %61 = arith.truncf %60 : vector<8x8xf32> to vector<8x8xbf16>
    %c0_44 = arith.constant 0 : index
    %c3 = arith.constant 3 : index
    %c0_45 = arith.constant 0 : index
    %c0_46 = arith.constant 0 : index
    %62 = vector.load %arg5[%c0_44, %c3, %c0_45, %c0_46] : memref<1x4x8x8xbf16, #tpu.memory_space<vmem>>, vector<1x1x8x8xbf16>
    %63 = vector.shape_cast %62 : vector<1x1x8x8xbf16> to vector<8x8xbf16>
    %64 = vector.shape_cast %61 : vector<8x8xbf16> to vector<1x1x8x8xbf16>
    tpu.vector_store %arg5[%c0_44, %c3, %c0_45, %c0_46], %64 {strides = array<i32>} : memref<1x4x8x8xbf16, #tpu.memory_space<vmem>>, vector<1x1x8x8xbf16>,
    %65 = vector.extract_strided_slice %6 {offsets = [0, 56], sizes = [8, 8], strides = [1, 1]} : vector<8x96xf32> to vector<8x8xf32>
    %66 = arith.truncf %65 : vector<8x8xf32> to vector<8x8xbf16>
    %c0_47 = arith.constant 0 : index
    %c3_48 = arith.constant 3 : index
    %c0_49 = arith.constant 0 : index
    %c0_50 = arith.constant 0 : index
    %67 = vector.load %arg6[%c0_47, %c3_48, %c0_49, %c0_50] : memref<1x4x8x8xbf16, #tpu.memory_space<vmem>>, vector<1x1x8x8xbf16>
    %68 = vector.shape_cast %67 : vector<1x1x8x8xbf16> to vector<8x8xbf16>
    %69 = vector.shape_cast %66 : vector<8x8xbf16> to vector<1x1x8x8xbf16>
    tpu.vector_store %arg6[%c0_47, %c3_48, %c0_49, %c0_50], %69 {strides = array<i32>} : memref<1x4x8x8xbf16, #tpu.memory_space<vmem>>, vector<1x1x8x8xbf16>,
    %70 = vector.extract_strided_slice %6 {offsets = [0, 88], sizes = [8, 8], strides = [1, 1]} : vector<8x96xf32> to vector<8x8xf32>
    %71 = arith.truncf %70 : vector<8x8xf32> to vector<8x8xbf16>
    %c0_51 = arith.constant 0 : index
    %c3_52 = arith.constant 3 : index
    %c0_53 = arith.constant 0 : index
    %c0_54 = arith.constant 0 : index
    %72 = vector.load %arg7[%c0_51, %c3_52, %c0_53, %c0_54] : memref<1x4x8x8xbf16, #tpu.memory_space<vmem>>, vector<1x1x8x8xbf16>
    %73 = vector.shape_cast %72 : vector<1x1x8x8xbf16> to vector<8x8xbf16>
    %74 = vector.shape_cast %71 : vector<8x8xbf16> to vector<1x1x8x8xbf16>
    tpu.vector_store %arg7[%c0_51, %c3_52, %c0_53, %c0_54], %74 {strides = array<i32>} : memref<1x4x8x8xbf16, #tpu.memory_space<vmem>>, vector<1x1x8x8xbf16>,
    return
  }
  func.func @transform_0(%arg0: i32, %arg1: i32) -> (i32, i32, i32) {
    %c0_i32 = arith.constant 0 : i32
    %c0_i32_0 = arith.constant 0 : i32
    return %arg0, %arg1, %c0_i32 : i32, i32, i32
  }
  func.func @transform_1(%arg0: i32, %arg1: i32) -> (i32, i32) {
    %c0_i32 = arith.constant 0 : i32
    %c0_i32_0 = arith.constant 0 : i32
    %c0_i32_1 = arith.constant 0 : i32
    return %c0_i32, %c0_i32_0 : i32, i32
  }
  func.func @transform_2(%arg0: i32, %arg1: i32) -> (i32, i32) {
    %c0_i32 = arith.constant 0 : i32
    %c0_i32_0 = arith.constant 0 : i32
    %c0_i32_1 = arith.constant 0 : i32
    return %c0_i32, %c0_i32_0 : i32, i32
  }
  func.func @transform_3(%arg0: i32, %arg1: i32) -> (i32, i32, i32, i32) {
    %c0_i32 = arith.constant 0 : i32
    %c0_i32_0 = arith.constant 0 : i32
    %c0_i32_1 = arith.constant 0 : i32
    return %arg0, %c0_i32, %arg1, %c0_i32_0 : i32, i32, i32, i32
  }
  func.func @transform_4(%arg0: i32, %arg1: i32) -> (i32, i32, i32, i32) {
    %c0_i32 = arith.constant 0 : i32
    %c0_i32_0 = arith.constant 0 : i32
    %c0_i32_1 = arith.constant 0 : i32
    return %arg0, %c0_i32, %arg1, %c0_i32_0 : i32, i32, i32, i32
  }
  func.func @transform_5(%arg0: i32, %arg1: i32) -> (i32, i32, i32, i32) {
    %c0_i32 = arith.constant 0 : i32
    %c0_i32_0 = arith.constant 0 : i32
    %c0_i32_1 = arith.constant 0 : i32
    return %arg0, %c0_i32, %arg1, %c0_i32_0 : i32, i32, i32, i32
  }
}

</mosaic_0001>

<bundles_post_ra>
// kernel: tpu_custom_call.1
= control target key start
LH: loop header
LB: loop body
LE: loop exit
PB: predicated region body
PF: predicated region fallthrough
CT: control target
= control target key end

     0   :  { %s1338_s0 = inlined_call_operand.hbm [shape: bf16[2,8,32], index: 0, kind: input, shape index: {}]   ;;  %s1339_s1 = inlined_call_operand.hbm [shape: bf16[32,96], index: 1, kind: input, shape index: {}]   ;;  %s1340_s2 = inlined_call_operand.vmem [shape: f32[1,96], index: 2, kind: input, shape index: {}]   ;;  %s1341_s3 = inlined_call_operand.hbm [shape: bf16[2,4,8,8], index: 3, kind: output, shape index: {0}]   ;;  %s1342_s4 = inlined_call_operand.hbm [shape: bf16[2,4,8,8], index: 4, kind: output, shape index: {1}]   ;;  %s1343_s5 = inlined_call_operand.hbm [shape: bf16[2,4,8,8], index: 5, kind: output, shape index: {2}]  }
   0x1   :  { %1347 = sst [smem:[#allocation16_spill]] %s1339_s1 }
   0x2   :  { %11 = vsyncpa [#allocation3], 0 }
   0x3   :  { %13 = vsyncpa [#allocation3 + $0x1], 0 }
   0x4   :  { %14 = vsyncpa [#allocation6], 0 }
   0x5   :  { %15 = vsyncpa [#allocation4], 0 }
   0x6   :  { %17 = vsyncpa [#allocation4 + $0x1], 0 }
   0x7   :  { %18 = vsyncpa [#allocation9], 0 }
   0x8   :  { %20 = vsyncpa [#allocation9 + $0x1], 0  ;;  %s1048_s18 = smov 0   ;;  %s1050_s19 = smov 0  }
   0x9   :  { %s1052_s20 = smov 0   ;;  %s1054_s21 = smov 0  }
   0xa   :  { %s1056_s22 = smov 0   ;;  %s1058_s23 = smov 0  }
   0xb LB: > { %s1079_s24 = sadd.s32 4294967295, %s995_s23   ;;  %s1344_s25 = sadd.s32 4294967294, %s995_s23   ;;  %s995_s23 = sphi %s1058_s23, %s26_s23   ;;  %s991_s22 = sphi %s1056_s22, %s1368_s22   ;;  %s987_s21 = sphi %s1054_s21, %s1367_s21   ;;  %s983_s20 = sphi %s1052_s20, %s1366_s20   ;;  %s979_s19 = sphi %s1050_s19, %s1365_s19   ;;  %s975_s18 = sphi %s1048_s18, %s1364_s18  }
   0xc   : > { %p60_p0 = scmp.ne.s32.totalorder %s979_s19, %s975_s18  ;;  %p1346_p1 = scmp.eq.s32.totalorder %s1079_s24, 0 }
   0xd   : > { %p134_p3 = scmp.eq.s32.totalorder %s1344_s25, 1  ;;  %p647_p5 = scmp.ge.s32.totalorder %s995_s23, 1 }
   0xe   : > { %p1090_p4 = por %p1346_p1, %p60_p0  ;;  %p197_p7 = scmp.lt.s32.totalorder %s995_s23, 3 }
   0xf   : > { %p1095_p6 = por %p134_p3, %p60_p0  ;;  %s997_s29 = smov [#allocation5]  }
  0x10   : > { %p1100_p8 = pnand %p647_p5, %p197_p7  ;;  %s209_s30 = sshll.u32 %s997_s29, 4  ;;  %s210_s30 = int_to_ptr.vmem [resolvable:$true] %s209_s30 }
  0x11   : > { %s1349_s27 = scalar_select %p1095_p6, 1, 0 }
  0x12   : > { %p712_p9 = pneg %p1100_p8  ;;  %s38_s7 = sadd.s32 1, %s991_s22 }
  0x13   : > { %s812_s8 = scalar_lea.vmem %s210_s30, 256  ;;  %p820_p5 = scmp.lt.s32.totalorder %s210_s30, %s210_s30 }
  0x14   : > { %p1109_p11 = pnand %p712_p9, %p1346_p1  ;;  %p813_p13 = scmp.ne.s32.totalorder %s210_s30, %s812_s8 }
  0x15   : > { %p821_p7 = scmp.lt.s32.totalorder %s812_s8, %s812_s8 }
  0x16   : > { %p803_p12 = pneg %p1109_p11 }
  0x17   : > { %p822_p2 = por %p821_p7, %p820_p5 }
  0x18   : > { %p815_p0 = pnand %p813_p13, %p803_p12 }
  0x1a   : > { %p816_p3 = pneg %p815_p0 }
  0x1c   : > { %p823_p6 = pnand %p822_p2, %p816_p3 }
  0x1e   : > { %826 = shalt.err (!%p823_p6)
}
  0x1f   : > { %s998_s9 = smov 64   ;;  %s999_s10 = smov 4  }
  0x20   : > { %s1352_s1 = sld [smem:[#allocation16_spill]]  ;;  %p40_p2 = scmp.ge.s32.totalorder %s38_s7, 2 }
  0x21   : > { %s47_s13 = sadd.s32 1, %s983_s20  ;;  %p54_p6 = scmp.ne.s32.totalorder %s983_s20, %s979_s19 }
  0x22   : > { %p55_p9 = scmp.eq.s32.totalorder %s995_s23, 0  ;;  %s1370_s7 = smov (%p40_p2, %s38_s7), 0 }
  0x23   : > { %1353 = sst [smem:[#allocation15_spill]] %s1370_s7  ;;  %p1355_p13 = scmp.eq.s32.totalorder %s1079_s24, 1 }
  0x24   : > { %p1127_p12 = por %p55_p9, %p54_p6  ;;  %s42_s16 = ssub.s32 %s991_s22, %s1370_s7 }
  0x25   : > { %p1133_p0 = por %p1355_p13, %p54_p6  ;;  %p731_p3 = scmp.lt.s32.totalorder %s995_s23, 2 }
  0x26   : > { %715 = dma.hbm_to_vmem [thread:$0]  (!%p1109_p11), %s1352_s1, 256, %s210_s30, [#allocation6], %s998_s9, %s998_s9, %s999_s10  }
  0x27   : > { %p45_p11 = scmp.eq.s32.totalorder %s42_s16, 0  ;;  %s226_s17 = sand.u32 1, %s983_s20  }
  0x28   : > { %s650_s29 = sshll.u32 %s226_s17, 2  ;;  %s651_s6 = sshll.u32 %s991_s22, 6 }
  0x29   : > { %s1142_s30 = scalar_select %p45_p11, %s983_s20, %s47_s13  }
  0x2a   : > { %s236_s10 = scalar_lea.hbm %s1338_s0, %s651_s6  ;;  %s230_s11 = scalar_lea.vmem [#allocation2], %s650_s29 }
  0x2b   : > { %s238_s12 = sshll.u32 %s230_s11, 4  ;;  %p1150_p5 = pnand %p731_p3, %p1127_p12  ;;  %s239_s12 = int_to_ptr.vmem [resolvable:$true] %s238_s12 }
  0x2c   : > { %s227_s1 = scalar_lea.sflag [#allocation3], %s226_s17  ;;  %s840_s16 = scalar_lea.vmem %s239_s12, 64 }
  0x2d   : > { %p829_p7 = pneg %p1150_p5  ;;  %p841_p2 = scmp.ne.s32.totalorder %s239_s12, %s840_s16 }
  0x2e   : > { %s1000_s13 = smov [#allocation2]  }
  0x2f   : > { %p843_p6 = pnand %p841_p2, %p829_p7  ;;  %s845_s7 = sshll.u32 %s1000_s13, 4  ;;  %s846_s7 = int_to_ptr.vmem [resolvable:$false] %s845_s7 }
  0x30   : > { %s847_s6 = scalar_lea.vmem %s846_s7, 128  ;;  %p848_p13 = scmp.lt.s32.totalorder %s239_s12, %s846_s7 }
  0x31   : > { %p844_p9 = pneg %p843_p6  ;;  %p849_p11 = scmp.lt.s32.totalorder %s847_s6, %s840_s16 }
  0x33   : > { %p850_p10 = por %p849_p11, %p848_p13 }
  0x35   : > { %p851_p1 = pnand %p850_p10, %p844_p9 }
  0x37   : > { %854 = shalt.err (!%p851_p1)
}
  0x38   : > { %719 = dma.hbm_to_vmem [thread:$0]  (!%p1150_p5), %s236_s10, 64, %s239_s12, %s227_s1  }
  0x39   : > { %247 = sbr.rel (%p1100_p8) target bundleno = 450 (0x1c2), region = 32  ;;  %s1161_s14 = sand.u32 (!%p1100_p8), 1, %s979_s19  }
  0x3a   : > { %s653_s17 = sshll.u32 (!%p1100_p8), %s1161_s14, 2  ;;  %s250_s29 = scalar_lea.sflag (!%p1100_p8), [#allocation3], %s1161_s14 }
  0x3b   : > { %s253_s8 = scalar_lea.vmem (!%p1100_p8), [#allocation2], %s653_s17 }
  0x3e   : > { %958 = dma.done.wait (%p1090_p4), %s250_s29, 64  }
  0x3f   : > { %960 = vsyncadd (%p1090_p4), %s250_s29, 4294967232  ;;  %p1358_p1 = scmp.eq.s32.totalorder %s1079_s24, 0 }
  0x41   : > { %962 = dma.done.wait (%p1358_p1), [#allocation6], 256   ;;  %p1359_p10 = pmov %p1358_p1 }
  0x42   : > { %v1001_v0 = vmov 0.0   ;;  %vm1002_vm0 = vmmov 0   ;;  %v799_v1 = vld [vmem:[#allocation5 + $0x8] sm:$0xff]   ;;  %v800_v2 = vld [vmem:[#allocation5] sm:$0xff]   ;;  %v295_v3 = vld [vmem:[%s253_s8] sm:$0xf] }
  0x43   : > { %964 = vsyncadd (%p1359_p10), [#allocation6], 4294967040  ;;  %692 = vmatprep.subr.bf16.mxu0 %v1001_v0  ;;  %696 = vmatprep.mubr.msk.bf16.mxu0 %vm1002_vm0, %v1001_v0  ;;  %vm319_vm1 = vcmask 261120   ;;  %v658_v4 = vld [vmem:[%s1340_s2] ss:$0 sm:$0xff]  ;;  %s1177_s26 = sshll.u32 %s1161_s14, 4 }
  0x44   : > { %693 = vmatpush3.bf16.msra.mxu0 %v799_v1  ;;  %vm365_vm2 = vcmask 60416   ;;  %s1003_s28 = smov 80   ;;  %s1004_s7 = smov 96  }
  0x45   : > { %694 = vmatprep.subr.bf16.mxu0 %v1001_v0  ;;  %s1180_s9 = scalar_lea.vmem [#allocation7], %s1177_s26  ;;  %s1005_s10 = smov 72  }
  0x46   : > { %s1006_s11 = smov 88   ;;  %s1007_s12 = smov 64  }
  0x47   : > { %s1008_s16 = smov 120   ;;  %s1009_s13 = smov 56  }
  0x48   : > { %695 = vmatpush3.bf16.msra.mxu0 %v800_v2  ;;  %s1010_s6 = smov 112   ;;  %s1011_s17 = smov 48  }
  0x49   : > { %s1012_s29 = smov 104   ;;  %s1013_s8 = smov 40  }
  0x4a   : > { %s286_s1 = scalar_lea.vmem [#allocation8], %s1177_s26 }
  0x4b   : > { %697 = vmatmul.mubr.msk.bf16.vlgmr.msra.gmra.mxu0 %vm319_vm1, %v295_v3  ;;  %s469_s25 = sshll.u32 %s286_s1, 4  ;;  %s1192_s25 = int_to_ptr.vmem [resolvable:$true] %s469_s25 }
 0x10b   : > { %v357_v5 = vpop.f32.mrf.mxu0 }
 0x10c   : > { %v358_v6 = vadd.f32 %v658_v4, %v357_v5 }
 0x10d   : > { %v698_v7 = vpop.f32.mrf.mxu0 }
 0x10e   : > { %v363_v8 = vmul.f32 0.35355338, %v358_v6  ;;  %v684_v9 = vpack.c.bf16 %v358_v6, %v358_v6 }
 0x10f   : > { %v360_v10 = vpop.f32.mrf.mxu0 }
 0x110   : > { %v364_v11 = vpack.c.bf16 %v363_v8, %v363_v8  ;;  %402 = vrot.lane.b32.xlu1 %v684_v9, %s1003_s28  ;;  %371 = vrot.lane.b32.xlu0 %v684_v9, %s1004_s7  ;;  %s432_s28 = sand.u32 1, %s1079_s24   ;;  %s1188_s7 = sshll.u32 %s987_s21, 8 }
 0x111   : > { %v699_v12 = vpop.f32.mrf.mxu0  ;;  %s1202_s21 = scalar_lea.sflag [#allocation9], %s432_s28  ;;  %s855_s24 = scalar_lea.vmem %s1192_s25, 256 }
 0x112   : > { %366 = vst.msk [vmem:[%s1180_s9] sm:$0xf] %vm365_vm2, %v364_v11  ;;  %p856_p4 = scmp.ne.s32.totalorder %s1192_s25, %s855_s24 }
 0x114   : > { %417 = vrot.lane.b32.xlu1 %v684_v9, %s1005_s10  ;;  %387 = vrot.lane.b32.xlu0 %v684_v9, %s1006_s11  ;;  %p857_p8 = pnand %p856_p4, %p1133_p0 }
 0x116   : > { %p858_p12 = pneg %p857_p8 }
 0x118   : > { %375 = vrot.lane.b32.xlu0 %v684_v9, %s1007_s12  ;;  %382 = vrot.lane.b32.xlu1 %v364_v11, %s1008_s16  ;;  %s1198_s16 = scalar_lea.hbm %s1342_s4, %s1188_s7 }
 0x11c   : > { %392 = vrot.lane.b32.xlu0 %v684_v9, %s1009_s13  ;;  %397 = vrot.lane.b32.xlu1 %v364_v11, %s1010_s6  ;;  %s1014_s13 = smov [#allocation8]  }
 0x11d   : > { %s859_s6 = sshll.u32 %s1014_s13, 4  ;;  %s860_s6 = int_to_ptr.vmem [resolvable:$false] %s859_s6 }
 0x11e   : > { %p862_p3 = scmp.lt.s32.totalorder %s1192_s25, %s860_s6 }
 0x120   : > { %407 = vrot.lane.b32.xlu0 %v684_v9, %s1011_s17  ;;  %412 = vrot.lane.b32.xlu1 %v364_v11, %s1012_s29  ;;  %s861_s17 = scalar_lea.vmem %s860_s6, 512 }
 0x121   : > { %p863_p5 = scmp.lt.s32.totalorder %s861_s17, %s855_s24 }
 0x123   : > { %p864_p7 = por %p863_p5, %p862_p3 }
 0x124   : > { %422 = vrot.lane.b32.xlu0 %v684_v9, %s1013_s8 }
 0x125   : > { %p865_p2 = pnand %p864_p7, %p858_p12 }
 0x182   : > { %v403_v13 = vpop.permute.xlu1 %402  ;;  %v372_v14 = vpop.permute.xlu0 %371 }
 0x183   : > { %668 = vst.msk [vmem:[%s286_s1 + $0x8] sm:$0xf] %vm365_vm2, %v403_v13  ;;  %374 = vst.msk [vmem:[%s286_s1] sm:$0xf] %vm365_vm2, %v372_v14 }
 0x186   : > { %v418_v15 = vpop.permute.xlu1 %417  ;;  %v388_v16 = vpop.permute.xlu0 %387 }
 0x187   : > { %671 = vst.msk [vmem:[%s286_s1 + $0xc] sm:$0xf] %vm365_vm2, %v418_v15  ;;  %665 = vst.msk [vmem:[%s286_s1 + $0x4] sm:$0xf] %vm365_vm2, %v388_v16 }
 0x188   : > { %868 = shalt.err (!%p865_p2)
}
 0x189   : > { %s869_s29 = scalar_lea.hbm %s1198_s16, 256  ;;  %s873_s28 = scalar_lea.hbm %s1342_s4, 512 }
 0x18a   : > { %p870_p6 = scmp.ne.s32.totalorder %s1198_s16, %s869_s29  ;;  %p874_p11 = scmp.lt.s32.totalorder %s1198_s16, %s1342_s4 }
 0x18b   : > { %p875_p1 = scmp.lt.s32.totalorder %s873_s28, %s869_s29 }
 0x18c   : > { %p871_p9 = pnand %p870_p6, %p1133_p0 }
 0x18d   : > { %p876_p10 = por %p875_p1, %p874_p11 }
 0x18e   : > { %p872_p13 = pneg %p871_p9 }
 0x190   : > { %p877_p4 = pnand %p876_p10, %p872_p13 }
 0x192   : > { %880 = shalt.err (!%p877_p4)
}
 0x193   : > { %s1015_s24 = smov 4   ;;  %v376_v17 = vpop.permute.xlu0 %375  ;;  %v383_v18 = vpop.permute.xlu1 %382  ;;  %s1229_s13 = scalar_lea.vmem [#allocation10], %s1177_s26 }
 0x194   : > { %707 = dma.vmem_to_hbm [thread:$0]  (%p1133_p0), %s1192_s25, 256, %s1198_s16, %s1202_s21, %s1007_s12, %s1007_s12, %s1015_s24  }
 0x195   : > { %378 = vst.msk [vmem:[%s1229_s13] sm:$0xf] %vm365_vm2, %v376_v17  ;;  %664 = vst.msk [vmem:[%s1180_s9 + $0x4] sm:$0xf] %vm365_vm2, %v383_v18  ;;  %s452_s6 = sshll.u32 %s1180_s9, 4  ;;  %s1246_s16 = scalar_lea.hbm %s1341_s3, %s1188_s7  ;;  %s1240_s6 = int_to_ptr.vmem [resolvable:$true] %s452_s6 }
 0x196   : > { %s486_s17 = sshll.u32 %s1229_s13, 4  ;;  %s428_s29 = scalar_lea.sflag [#allocation4], %s1161_s14  ;;  %s1279_s17 = int_to_ptr.vmem [resolvable:$true] %s486_s17 }
 0x197   : > { %v393_v19 = vpop.permute.xlu0 %392  ;;  %v398_v20 = vpop.permute.xlu1 %397  ;;  %s881_s8 = scalar_lea.vmem %s1240_s6, 256  ;;  %s1016_s1 = smov [#allocation7]  }
 0x198   : > { %666 = vst.msk [vmem:[%s1229_s13 + $0x4] sm:$0xf] %vm365_vm2, %v393_v19  ;;  %667 = vst.msk [vmem:[%s1180_s9 + $0x8] sm:$0xf] %vm365_vm2, %v398_v20  ;;  %p882_p8 = scmp.ne.s32.totalorder %s1240_s6, %s881_s8  ;;  %s885_s28 = sshll.u32 %s1016_s1, 4  ;;  %s886_s28 = int_to_ptr.vmem [resolvable:$false] %s885_s28 }
 0x199   : > { %s887_s10 = scalar_lea.vmem %s886_s28, 512  ;;  %p888_p5 = scmp.lt.s32.totalorder %s1240_s6, %s886_s28 }
 0x19a   : > { %p883_p12 = pnand %p882_p8, %p1133_p0  ;;  %p889_p7 = scmp.lt.s32.totalorder %s887_s10, %s881_s8 }
 0x19b   : > { %v408_v21 = vpop.permute.xlu0 %407  ;;  %v413_v22 = vpop.permute.xlu1 %412 }
 0x19c   : > { %669 = vst.msk [vmem:[%s1229_s13 + $0x8] sm:$0xf] %vm365_vm2, %v408_v21  ;;  %670 = vst.msk [vmem:[%s1180_s9 + $0xc] sm:$0xf] %vm365_vm2, %v413_v22  ;;  %p884_p3 = pneg %p883_p12  ;;  %p890_p2 = por %p889_p7, %p888_p5 }
 0x19e   : > { %p891_p6 = pnand %p890_p2, %p884_p3 }
 0x1a0   : > { %894 = shalt.err (!%p891_p6)
}
 0x1a1   : > { %s895_s9 = scalar_lea.hbm %s1246_s16, 256  ;;  %s899_s26 = scalar_lea.hbm %s1341_s3, 512 }
 0x1a2   : > { %p896_p9 = scmp.ne.s32.totalorder %s1246_s16, %s895_s9  ;;  %p900_p1 = scmp.lt.s32.totalorder %s1246_s16, %s1341_s3 }
 0x1a3   : > { %p901_p10 = scmp.lt.s32.totalorder %s899_s26, %s895_s9 }
 0x1a4   : > { %p897_p13 = pnand %p896_p9, %p1133_p0 }
 0x1a5   : > { %p902_p4 = por %p901_p10, %p900_p1 }
 0x1a6   : > { %p898_p11 = pneg %p897_p13 }
 0x1a8   : > { %p903_p8 = pnand %p902_p4, %p898_p11 }
 0x1aa   : > { %906 = shalt.err (!%p903_p8)
}
 0x1ab   : > { %706 = dma.vmem_to_hbm [thread:$0]  (%p1133_p0), %s1240_s6, 256, %s1246_s16, %s428_s29, %s1007_s12, %s1007_s12, %s1015_s24   ;;  %v423_v23 = vpop.permute.xlu0 %422 }
 0x1ac   : > { %s1285_s10 = scalar_lea.hbm %s1343_s5, %s1188_s7  ;;  %672 = vst.msk [vmem:[%s1229_s13 + $0xc] sm:$0xf] %vm365_vm2, %v423_v23  ;;  %s907_s9 = scalar_lea.vmem %s1279_s17, 256 }
 0x1ad   : > { %p908_p12 = scmp.ne.s32.totalorder %s1279_s17, %s907_s9  ;;  %s1017_s6 = smov [#allocation10]  }
 0x1ae   : > { %s911_s16 = sshll.u32 %s1017_s6, 4  ;;  %s912_s16 = int_to_ptr.vmem [resolvable:$false] %s911_s16 }
 0x1af   : > { %p909_p3 = pnand %p908_p12, %p1133_p0  ;;  %s913_s29 = scalar_lea.vmem %s912_s16, 512 }
 0x1b0   : > { %p914_p7 = scmp.lt.s32.totalorder %s1279_s17, %s912_s16  ;;  %p915_p2 = scmp.lt.s32.totalorder %s913_s29, %s907_s9 }
 0x1b1   : > { %p910_p5 = pneg %p909_p3 }
 0x1b2   : > { %p916_p6 = por %p915_p2, %p914_p7 }
 0x1b4   : > { %p917_p9 = pnand %p916_p6, %p910_p5 }
 0x1b6   : > { %920 = shalt.err (!%p917_p9)
}
 0x1b7   : > { %s921_s7 = scalar_lea.hbm %s1285_s10, 256  ;;  %s925_s11 = scalar_lea.hbm %s1343_s5, 512 }
 0x1b8   : > { %p922_p13 = scmp.ne.s32.totalorder %s1285_s10, %s921_s7  ;;  %p926_p10 = scmp.lt.s32.totalorder %s1285_s10, %s1343_s5 }
 0x1b9   : > { %p927_p4 = scmp.lt.s32.totalorder %s925_s11, %s921_s7 }
 0x1ba   : > { %p923_p11 = pnand %p922_p13, %p1133_p0 }
 0x1bb   : > { %p928_p8 = por %p927_p4, %p926_p10 }
 0x1bc   : > { %p924_p1 = pneg %p923_p11 }
 0x1be   : > { %p929_p12 = pnand %p928_p8, %p924_p1 }
 0x1c0   : > { %932 = shalt.err (!%p929_p12)
}
 0x1c1   : > { %708 = dma.vmem_to_hbm [thread:$0]  (%p1133_p0), %s1279_s17, 256, %s1285_s10, %s1202_s21, %s1007_s12, %s1007_s12, %s1015_s24  }
 0x1c2 PF: > { %s501_s1 = sand.u32 1, %s975_s18   ;;  %p1360_p3 = scmp.ne.s32.totalorder %s1349_s27, 0 }
 0x1c3   : > { %p1361_p5 = scmp.ge.s32.totalorder %s995_s23, 2  ;;  %s502_s8 = scalar_lea.sflag [#allocation4], %s501_s1 }
 0x1c5   : > { %p721_p7 = pnand %p1361_p5, %p1360_p3 }
 0x1c7   : > { %p722_p2 = pneg %p721_p7 }
 0x1c9   : > { %966 = dma.done.wait (%p722_p2), %s502_s8, 256  }
 0x1ca   : > { %968 = vsyncadd (%p722_p2), %s502_s8, 4294967040  ;;  %s1362_s15 = sadd.s32 4294967294, %s995_s23  }
 0x1cb   : > { %s510_s28 = sand.u32 1, %s1362_s15  }
 0x1cc   : > { %s511_s9 = scalar_lea.sflag [#allocation9], %s510_s28 }
 0x1cd   : > { %970 = dma.done.wait (%p722_p2), %s511_s9, 512  }
 0x1ce   : > { %972 = vsyncadd (%p722_p2), %s511_s9, 4294966784  ;;  %s26_s23 = sadd.s32 1, %s995_s23   ;;  %s1363_s27 = sld [smem:[#allocation15_spill]] }
 0x1cf   : > { %p23_p0 = scmp.ge.s32.totalorder %s26_s23, 4   ;;  %s1364_s18 = smov %s979_s19 }
 0x1d0   : > { %s1365_s19 = smov %s983_s20  ;;  %s1366_s20 = smov %s1142_s30 }
 0x1d1   : > { %s1367_s21 = smov %s991_s22  ;;  %25 = sbr.rel (!%p23_p0) target bundleno = 11 (0xb), region = 122 }
 0x1d4   : > { %s1368_s22 = smov %s1363_s27 }
 0x1d6   :  { %525 = vsyncpa [#allocation3], 1 }
 0x1d7   :  { %527 = vsyncpa [#allocation3 + $0x1], 1 }
 0x1d8   :  { %528 = vsyncpa [#allocation6], 1 }
 0x1d9   :  { %529 = vsyncpa [#allocation4], 1 }
 0x1da   :  { %531 = vsyncpa [#allocation4 + $0x1], 1 }
 0x1db   :  { %532 = vsyncpa [#allocation9], 1 }
 0x1dc   :  { %534 = vsyncpa [#allocation9 + $0x1], 1 }

</bundles_post_ra>
